<compile_context>
chip_gen: v5e
topology: v5e:2x2
jax: 0.10.0
libtpu: 0.0.40
codegen_flags: <defaults>
</compile_context>

<pallas_src>
import functools

import jax
import jax.numpy as jnp
from jax.experimental import pallas as pl
from jax.experimental.pallas import tpu as pltpu


# ----------------------------------------------------------------------------
# Encoder: conv implemented as im2col (glue) + tiled Pallas matmul+bias+ReLU
# ----------------------------------------------------------------------------
def _mm_bias_kernel(x_ref, w_ref, b_ref, o_ref, *, relu):
    acc = jnp.dot(x_ref[...], w_ref[...], preferred_element_type=jnp.float32)
    acc = acc + b_ref[...]
    if relu:
        acc = jnp.maximum(acc, 0.0)
    o_ref[...] = acc


def matmul_bias(x, w, b, relu=True, tm=512):
    """x: (M, K), w: (K, N), b: (1, N) -> (M, N); tiled over M and pipelined."""
    M, K = x.shape
    N = w.shape[1]
    tm = min(tm, M)
    return pl.pallas_call(
        functools.partial(_mm_bias_kernel, relu=relu),
        out_shape=jax.ShapeDtypeStruct((M, N), jnp.float32),
        grid_spec=pltpu.PrefetchScalarGridSpec(
            num_scalar_prefetch=0,
            grid=(pl.cdiv(M, tm),),
            in_specs=[pl.BlockSpec((tm, K), lambda i: (i, 0)),
                      pl.BlockSpec((K, N), lambda i: (0, 0)),
                      pl.BlockSpec((1, N), lambda i: (0, 0))],
            out_specs=pl.BlockSpec((tm, N), lambda i: (i, 0)),
        ),
        compiler_params=pltpu.CompilerParams(
            dimension_semantics=("parallel",)),
    )(x, w, b)


def im2col(x_nhwc, kh, kw, stride, pad):
    # TODO(synk): fuse the patch extraction into the conv kernel (9 shifted
    # matmuls) to avoid materializing the 9x-expanded patch tensor in HBM.
    B, H, W, C = x_nhwc.shape
    xp = jnp.pad(x_nhwc, ((0, 0), (pad, pad), (pad, pad), (0, 0)))
    Ho = (H + 2 * pad - kh) // stride + 1
    Wo = (W + 2 * pad - kw) // stride + 1
    cols = []
    for i in range(kh):
        for j in range(kw):
            cols.append(xp[:, i:i + Ho * stride:stride, j:j + Wo * stride:stride, :])
    patches = jnp.concatenate(cols, axis=-1)  # (B, Ho, Wo, kh*kw*C)
    return patches.reshape(B * Ho * Wo, kh * kw * C), B, Ho, Wo


def encoder_cnn(images_nchw, params):
    """EncoderCNN stand-in: NCHW image -> (B, num_pixels, encoder_dim) features."""
    x = jnp.transpose(images_nchw, (0, 2, 3, 1))  # NCHW -> NHWC
    for w, b in ((params["conv1_w"], params["conv1_b"]),
                 (params["conv2_w"], params["conv2_b"])):
        patches, B, Ho, Wo = im2col(x, 3, 3, 2, 1)
        y = matmul_bias(patches, w, b, relu=True)          # Pallas hot path
        x = y.reshape(B, Ho, Wo, w.shape[1])
    B, Ho, Wo, C = x.shape
    return x.reshape(B, Ho * Wo, C)                        # (B, P, encoder_dim)


# ----------------------------------------------------------------------------
# Decoder: one Pallas kernel, grid=(batch_tiles, T); h/c/u_hs in VMEM scratch
# ----------------------------------------------------------------------------
def decoder_step_kernel(feat_ref, emb_ref,
                        uw_ref, ub_ref, ww_ref, wb_ref, aw_ref, ab_ref,
                        ihw_ref, ihb_ref, icw_ref, icb_ref,
                        wih_e_ref, wih_c_ref, bih_ref, whh_ref, bhh_ref,
                        fcw_ref, fcb_ref,
                        pred_ref, alpha_ref,
                        h_ref, c_ref, uhs_ref):
    TB, P, E = feat_ref.shape
    D = h_ref.shape[1]
    A = uhs_ref.shape[2]
    t = pl.program_id(1)
    feats = feat_ref[...]                                     # (TB, P, E), resident

    # init_hidden_state(features) + hoisted time-invariant attention projection
    @pl.when(t == 0)
    def _():
        mean_f = jnp.mean(feats, axis=1)                      # (TB, E)
        h_ref[...] = (jnp.dot(mean_f, ihw_ref[...],
                              preferred_element_type=jnp.float32) + ihb_ref[...])
        c_ref[...] = (jnp.dot(mean_f, icw_ref[...],
                              preferred_element_type=jnp.float32) + icb_ref[...])
        uw_b = jnp.broadcast_to(uw_ref[...], (TB, E, A))
        uhs_ref[...] = (jnp.einsum("bpe,bea->bpa", feats, uw_b,
                                   preferred_element_type=jnp.float32)
                        + ub_ref[...])                        # (TB, P, A)

    h = h_ref[...]
    c = c_ref[...]
    u_hs = uhs_ref[...]                                       # hoisted, reused

    # ---- Bahdanau attention ----
    w_ah = (jnp.dot(h, ww_ref[...],
                    preferred_element_type=jnp.float32) + wb_ref[...])    # (TB,A)
    comb = jnp.tanh(u_hs + w_ah[:, None, :])                              # (TB,P,A)
    scores = jnp.sum(comb * aw_ref[...][None], axis=-1) + ab_ref[...]     # (TB,P)
    scores = scores - jnp.max(scores, axis=1, keepdims=True)
    expd = jnp.exp(scores)
    denom = jnp.sum(expd, axis=1, keepdims=True)
    alpha = expd * pl.reciprocal(denom, approx=True)                      # (TB,P)
    context = jnp.einsum("bqp,bpe->bqe", alpha[:, None, :], feats,
                         preferred_element_type=jnp.float32)[:, 0, :]     # (TB,E)

    # ---- LSTMCell(embed ++ context), concat replaced by two summed matmuls ----
    emb = emb_ref[...]                                                    # (TB,Em)
    gates = (jnp.dot(emb, wih_e_ref[...], preferred_element_type=jnp.float32)
             + jnp.dot(context, wih_c_ref[...], preferred_element_type=jnp.float32)
             + bih_ref[...]
             + jnp.dot(h, whh_ref[...], preferred_element_type=jnp.float32)
             + bhh_ref[...])                                              # (TB,4D)
    sig = jax.nn.sigmoid(gates)            # one full-width sigmoid
    i_g = sig[:, 0:D]
    f_g = sig[:, D:2 * D]
    o_g = sig[:, 3 * D:4 * D]
    g_g = jnp.tanh(gates[:, 2 * D:3 * D])  # tanh only on the g slice
    c_new = f_g * c + i_g * g_g
    h_new = o_g * jnp.tanh(c_new)
    h_ref[...] = h_new
    c_ref[...] = c_new

    # ---- output projection (dropout == identity) ----
    logits = (jnp.dot(h_new, fcw_ref[...],
                      preferred_element_type=jnp.float32) + fcb_ref[...])  # (TB,V)
    # outputs are VMEM-resident over T; written back once per batch tile
    pred_ref[t] = logits
    alpha_ref[t] = alpha


def decoder_rnn(features, captions, params):
    """Teacher-forced ('train' mode) attention decoder.

    features: (B, P, E); captions: (B, T+1) int32
    returns preds (B, T, V), alphas (B, T, P)
    """
    B, P, E = features.shape
    T = captions.shape[1] - 1
    Em = params["embedding"].shape[1]
    D = params["init_h_w"].shape[1]
    V = params["fc_w"].shape[1]
    A = params["U_w"].shape[1]

    # batch tile: whole batch for tiny B; 8-row (sublane-aligned) tiles otherwise
    tb = 8 if (B > 8 and B % 8 == 0) else B
    n_bt = B // tb

    # Embedding gather stays in plain JAX (glue); time-major for the kernel.
    embeds = jnp.take(params["embedding"], captions[:, :T], axis=0)   # (B,T,Em)
    embeds_tbe = jnp.transpose(embeds, (1, 0, 2))                     # (T,B,Em)

    W_ih = params["W_ih"]
    weights = [params["U_w"], params["U_b"], params["W_w"], params["W_b"],
               params["A_w"], params["A_b"],
               params["init_h_w"], params["init_h_b"],
               params["init_c_w"], params["init_c_b"],
               W_ih[:Em], W_ih[Em:],                      # split: no in-kernel concat
               params["b_ih"], params["W_hh"], params["b_hh"],
               params["fc_w"], params["fc_b"]]

    def full_spec(arr):
        nd = arr.ndim
        return pl.BlockSpec(arr.shape, lambda b, t, _nd=nd: (0,) * _nd)

    in_specs = [pl.BlockSpec((tb, P, E), lambda b, t: (b, 0, 0)),        # features
                pl.BlockSpec((None, tb, Em), lambda b, t: (t, b, 0))]    # embeds[t]
    in_specs += [full_spec(w) for w in weights]

    # Constant block index over the T axis => outputs stay resident in VMEM and
    # are flushed to HBM once per batch tile (no per-step masked writebacks).
    out_specs = [pl.BlockSpec((T, tb, V), lambda b, t: (0, b, 0)),       # preds
                 pl.BlockSpec((T, tb, P), lambda b, t: (0, b, 0))]       # alphas

    preds_tbv, alphas_tbp = pl.pallas_call(
        decoder_step_kernel,
        out_shape=(jax.ShapeDtypeStruct((T, B, V), jnp.float32),
                   jax.ShapeDtypeStruct((T, B, P), jnp.float32)),
        grid_spec=pltpu.PrefetchScalarGridSpec(
            num_scalar_prefetch=0,
            grid=(n_bt, T),
            in_specs=in_specs,
            out_specs=out_specs,
            scratch_shapes=[pltpu.VMEM((tb, D), jnp.float32),      # h
                            pltpu.VMEM((tb, D), jnp.float32),      # c
                            pltpu.VMEM((tb, P, A), jnp.float32)],  # hoisted U(feats)
        ),
        compiler_params=pltpu.CompilerParams(
            dimension_semantics=("parallel", "arbitrary"),   # batch || , T recurrent
            vmem_limit_bytes=64 * 1024 * 1024),
    )(features, embeds_tbe, *weights)

    preds = jnp.transpose(preds_tbv, (1, 0, 2))    # (B, T, V)
    alphas = jnp.transpose(alphas_tbp, (1, 0, 2))  # (B, T, P)
    return preds, alphas


# ----------------------------------------------------------------------------
# EncoderDecoder wrapper
# ----------------------------------------------------------------------------
def encoder_decoder_forward(images, captions, params, mode="train"):
    features = encoder_cnn(images, params)
    outputs = decoder_rnn(features, captions, params)
    return outputs


def generate_id_sequence_from_predictions(predictions):
    return jnp.argmax(predictions, axis=2)


# ----------------------------------------------------------------------------
# Deterministic synthetic parameters
# ----------------------------------------------------------------------------
def init_params(key, *, embed_size, vocab_size, attention_dim, encoder_dim,
                decoder_dim, conv1_out=16, in_ch=3):
    keys = jax.random.split(key, 32)   # 21 keys consumed; headroom avoids StopIteration
    k = iter(keys)

    def w(shape, scale=0.1):
        return (scale * jax.random.normal(next(k), shape)).astype(jnp.float32)

    E, D, A, Em, V = encoder_dim, decoder_dim, attention_dim, embed_size, vocab_size
    return {
        # encoder convs stored pre-flattened for im2col: (kh*kw*Cin, Cout)
        "conv1_w": w((3 * 3 * in_ch, conv1_out)), "conv1_b": w((1, conv1_out)),
        "conv2_w": w((3 * 3 * conv1_out, E)),     "conv2_b": w((1, E)),
        # decoder
        "embedding": w((V, Em)),
        "U_w": w((E, A)), "U_b": w((1, A)),
        "W_w": w((D, A)), "W_b": w((1, A)),
        "A_w": w((1, A)), "A_b": w((1, 1)),      # A: attention_dim -> 1 (stored as row)
        "init_h_w": w((E, D)), "init_h_b": w((1, D)),
        "init_c_w": w((E, D)), "init_c_b": w((1, D)),
        # LSTMCell(embed_size + encoder_dim -> decoder_dim), gate order i,f,g,o
        "W_ih": w((Em + E, 4 * D)), "b_ih": w((1, 4 * D)),
        "W_hh": w((D, 4 * D)),      "b_hh": w((1, 4 * D)),
        "fc_w": w((D, V)), "fc_b": w((1, V)),
    }


if __name__ == "__main__":
    embed_size = 32
    vocab_size = 64
    attention_dim = 32
    encoder_dim = 32
    decoder_dim = 32
    sequence_length = 8

    key = jax.random.PRNGKey(0)
    k_par, k_img, k_cap = jax.random.split(key, 3)

    params = init_params(k_par, embed_size=embed_size, vocab_size=vocab_size,
                         attention_dim=attention_dim, encoder_dim=encoder_dim,
                         decoder_dim=decoder_dim)

    images = jax.random.normal(k_img, (2, 3, 16, 16), dtype=jnp.float32)  # NCHW
    captions = jax.random.randint(k_cap, (2, sequence_length + 1), 0, vocab_size,
                                  dtype=jnp.int32)

    preds, alphas = encoder_decoder_forward(images, captions, params, mode="train")
    preds = jax.block_until_ready(preds)
    alphas = jax.block_until_ready(alphas)
    ids = jax.block_until_ready(generate_id_sequence_from_predictions(preds))

    assert preds.shape == (2, sequence_length, vocab_size)
    assert alphas.shape == (2, sequence_length, 16)   # 16 = num_pixels (4x4)
    assert ids.shape == (2, sequence_length)
    assert bool(jnp.all(jnp.isfinite(preds)))
    assert bool(jnp.all(jnp.isfinite(alphas)))
    print("KERNEL_OK")
</pallas_src>

<mosaic_0001>
module attributes {stable_mosaic.version = 11 : i64} {
  func.func @_mm_bias_kernel(%arg0: i32, %arg1: memref<128x27xf32, #tpu.memory_space<vmem>>, %arg2: memref<27x16xf32, #tpu.memory_space<vmem>>, %arg3: memref<1x16xf32, #tpu.memory_space<vmem>>, %arg4: memref<128x16xf32, #tpu.memory_space<vmem>>) attributes {dimension_semantics = [#tpu.dimension_semantics<parallel>], iteration_bounds = array<i64: 1>, scalar_prefetch = 0 : i64, scratch_operands = 0 : i64, tpu.core_type = #tpu.core_type<tc>, window_params = [{transform_indices = @transform_0, window_bounds = array<i64: 128, 27>}, {pipeline_mode = #tpu.pipeline_mode<synchronous>, transform_indices = @transform_1, window_bounds = array<i64: 27, 16>}, {pipeline_mode = #tpu.pipeline_mode<synchronous>, transform_indices = @transform_2, window_bounds = array<i64: 1, 16>}, {transform_indices = @transform_3, window_bounds = array<i64: 128, 16>}]} {
    %c0 = arith.constant 0 : index
    %c0_0 = arith.constant 0 : index
    %0 = vector.load %arg1[%c0, %c0_0] : memref<128x27xf32, #tpu.memory_space<vmem>>, vector<128x27xf32>
    %c0_1 = arith.constant 0 : index
    %c0_2 = arith.constant 0 : index
    %1 = vector.load %arg2[%c0_1, %c0_2] : memref<27x16xf32, #tpu.memory_space<vmem>>, vector<27x16xf32>
    %cst = arith.constant dense<0.000000e+00> : vector<128x16xf32>
    %2 = tpu.matmul %0, %1, %cst {dimension_numbers = #tpu.dot_dimension_numbers<[1], [0], [0], [1], [0, 0, 1, 1], [], []>} : vector<128x27xf32>, vector<27x16xf32>, vector<128x16xf32> -> vector<128x16xf32>
    %c0_3 = arith.constant 0 : index
    %c0_4 = arith.constant 0 : index
    %3 = vector.load %arg3[%c0_3, %c0_4] : memref<1x16xf32, #tpu.memory_space<vmem>>, vector<1x16xf32>
    %4 = vector.broadcast %3 : vector<1x16xf32> to vector<128x16xf32>
    %5 = arith.addf %2, %4 : vector<128x16xf32>
    %cst_5 = arith.constant 0.000000e+00 : f32
    %6 = vector.broadcast %cst_5 : f32 to vector<128x16xf32>
    %7 = arith.maximumf %5, %6 : vector<128x16xf32>
    %c0_6 = arith.constant 0 : index
    %c0_7 = arith.constant 0 : index
    %8 = vector.load %arg4[%c0_6, %c0_7] : memref<128x16xf32, #tpu.memory_space<vmem>>, vector<128x16xf32>
    tpu.vector_store %arg4[%c0_6, %c0_7], %7 {strides = array<i32>} : memref<128x16xf32, #tpu.memory_space<vmem>>, vector<128x16xf32>,
    return
  }
  func.func @transform_0(%arg0: i32) -> (i32, i32) {
    %c0_i32 = arith.constant 0 : i32
    %c0_i32_0 = arith.constant 0 : i32
    return %arg0, %c0_i32 : i32, i32
  }
  func.func @transform_1(%arg0: i32) -> (i32, i32) {
    %c0_i32 = arith.constant 0 : i32
    %c0_i32_0 = arith.constant 0 : i32
    %c0_i32_1 = arith.constant 0 : i32
    return %c0_i32, %c0_i32_0 : i32, i32
  }
  func.func @transform_2(%arg0: i32) -> (i32, i32) {
    %c0_i32 = arith.constant 0 : i32
    %c0_i32_0 = arith.constant 0 : i32
    %c0_i32_1 = arith.constant 0 : i32
    return %c0_i32, %c0_i32_0 : i32, i32
  }
  func.func @transform_3(%arg0: i32) -> (i32, i32) {
    %c0_i32 = arith.constant 0 : i32
    %c0_i32_0 = arith.constant 0 : i32
    return %arg0, %c0_i32 : i32, i32
  }
}

</mosaic_0001>

<bundles_post_ra>
// kernel: tpu_custom_call.1
= control target key start
LH: loop header
LB: loop body
LE: loop exit
PB: predicated region body
PF: predicated region fallthrough
CT: control target
= control target key end

     0   :  { %vm87_vm0 = vcmask 1042432   ;;  %vm38_vm1 = vcmask 220160   ;;  %vm172_vm2 = vcmask 130048   ;;  %s386_s1 = inlined_call_operand.vmem [shape: f32[27,16], index: 1, kind: input, shape index: {}]   ;;  %s387_s0 = inlined_call_operand.vmem [shape: f32[128,27], index: 0, kind: input, shape index: {}]   ;;  %s388_s2 = inlined_call_operand.vmem [shape: f32[1,16], index: 2, kind: input, shape index: {}]   ;;  %s389_s3 = inlined_call_operand.vmem [shape: f32[128,16], index: 3, kind: output, shape index: {}]  }
   0x1   :  { %v33_v0 = vld [vmem:[%s386_s1 + $0x18] sm:$0x7]  ;;  %v32_v1 = vld [vmem:[%s386_s1 + $0x10] sm:$0xff]  ;;  %v31_v2 = vld [vmem:[%s386_s1 + $0x8] sm:$0xff] }
   0x2   :  { %211 = vmatpush.msk.msra.mxu2 %vm87_vm0, %v33_v0  ;;  %212 = vmatpush.msk.msra.mxu3 %vm87_vm0, %v33_v0  ;;  %v30_v3 = vld [vmem:[%s386_s1] sm:$0xff]  ;;  %v23_v8 = vld [vmem:[%s387_s0 + $0x48] sm:$0xff]  ;;  %v24_v12 = vld [vmem:[%s387_s0 + $0x50] sm:$0xff] }
   0x3   :  { %193 = vmatpush.msk.msra.mxu0 %vm87_vm0, %v33_v0  ;;  %210 = vmatpush.msk.msra.mxu1 %vm87_vm0, %v33_v0  ;;  %v22_v4 = vld [vmem:[%s387_s0 + $0x40] sm:$0xff]  ;;  %v27_v9 = vld [vmem:[%s387_s0 + $0x68] sm:$0xff]  ;;  %v28_v13 = vld [vmem:[%s387_s0 + $0x70] sm:$0xff] }
   0x4   :  { %214 = vmatpush.msra.mxu2 %v32_v1  ;;  %215 = vmatpush.msra.mxu3 %v32_v1  ;;  %v26_v5 = vld [vmem:[%s387_s0 + $0x60] sm:$0xff]  ;;  %v15_v10 = vld [vmem:[%s387_s0 + $0x8] sm:$0xff]  ;;  %v16_v14 = vld [vmem:[%s387_s0 + $0x10] sm:$0xff] }
   0x5   :  { %104 = vmatpush.msra.mxu0 %v32_v1  ;;  %213 = vmatpush.msra.mxu1 %v32_v1  ;;  %v14_v6 = vld [vmem:[%s387_s0] sm:$0xff]  ;;  %v19_v11 = vld [vmem:[%s387_s0 + $0x28] sm:$0xff]  ;;  %v20_v15 = vld [vmem:[%s387_s0 + $0x30] sm:$0xff] }
   0x6   :  { %217 = vmatpush.msra.mxu2 %v31_v2  ;;  %218 = vmatpush.msra.mxu3 %v31_v2  ;;  %v18_v7 = vld [vmem:[%s387_s0 + $0x20] sm:$0xff]  ;;  %v25_v16 = vld [vmem:[%s387_s0 + $0x58] sm:$0xff] }
   0x7   :  { %105 = vmatpush.msra.mxu0 %v31_v2  ;;  %216 = vmatpush.msra.mxu1 %v31_v2  ;;  %v29_v17 = vld [vmem:[%s387_s0 + $0x78] sm:$0xff]  ;;  %v222_v20 = vld [vmem:[%s388_s2] ss:$0 sm:$0xff] }
   0x8   :  { %220 = vmatpush.msra.mxu2 %v30_v3  ;;  %221 = vmatpush.msra.mxu3 %v30_v3  ;;  %v17_v18 = vld [vmem:[%s387_s0 + $0x18] sm:$0xff] }
   0x9   :  { %202 = vmatmul.msk.f32.vlgmr.msra.gmra.mxu2 %vm38_vm1, %v22_v4  ;;  %206 = vmatmul.msk.f32.vlgmr.msra.gmra.mxu3 %vm38_vm1, %v26_v5  ;;  %v21_v19 = vld [vmem:[%s387_s0 + $0x38] sm:$0xff] }
   0xa   :  { %106 = vmatpush.msra.mxu0 %v30_v3  ;;  %219 = vmatpush.msra.mxu1 %v30_v3 }
   0xb   :  { %194 = vmatmul.msk.f32.vlgmr.msra.gmra.mxu0 %vm38_vm1, %v14_v6  ;;  %198 = vmatmul.msk.f32.vlgmr.msra.gmra.mxu1 %vm38_vm1, %v18_v7 }
  0x11   :  { %203 = vmatmul.msk.f32.gmra.mxu2 %vm38_vm1, %v23_v8  ;;  %207 = vmatmul.msk.f32.gmra.mxu3 %vm38_vm1, %v27_v9 }
  0x13   :  { %195 = vmatmul.msk.f32.gmra.mxu0 %vm38_vm1, %v15_v10  ;;  %199 = vmatmul.msk.f32.gmra.mxu1 %vm38_vm1, %v19_v11 }
  0x19   :  { %204 = vmatmul.msk.f32.gmra.mxu2 %vm38_vm1, %v24_v12  ;;  %208 = vmatmul.msk.f32.gmra.mxu3 %vm38_vm1, %v28_v13 }
  0x1b   :  { %196 = vmatmul.msk.f32.gmra.mxu0 %vm38_vm1, %v16_v14  ;;  %200 = vmatmul.msk.f32.gmra.mxu1 %vm38_vm1, %v20_v15 }
  0x21   :  { %205 = vmatmul.msk.f32.gmra.mxu2 %vm38_vm1, %v25_v16  ;;  %209 = vmatmul.msk.f32.gmra.mxu3 %vm38_vm1, %v29_v17 }
  0x23   :  { %197 = vmatmul.msk.f32.gmra.mxu0 %vm38_vm1, %v17_v18  ;;  %201 = vmatmul.msk.f32.gmra.mxu1 %vm38_vm1, %v21_v19 }
  0x88   :  { %v108_v21 = vpop.f32.mrf.mxu0  ;;  %v120_v22 = vpop.f32.mrf.mxu1 }
  0x89   :  { %v109_v23 = vadd.f32 %v222_v20, %v108_v21  ;;  %v121_v24 = vadd.f32 %v222_v20, %v120_v22 }
  0x8b   :  { %v156_v25 = vmax.f32 %v109_v23, 0.0  ;;  %v160_v26 = vmax.f32 %v121_v24, 0.0 }
  0x8c   :  { %v132_v27 = vpop.f32.mrf.mxu2  ;;  %v144_v28 = vpop.f32.mrf.mxu3 }
  0x8d   :  { %173 = vst.msk [vmem:[%s389_s3] sm:$0xff] %vm172_vm2, %v156_v25  ;;  %v133_v29 = vadd.f32 %v222_v20, %v132_v27  ;;  %v145_v30 = vadd.f32 %v222_v20, %v144_v28 }
  0x8e   :  { %177 = vst.msk [vmem:[%s389_s3 + $0x20] sm:$0xff] %vm172_vm2, %v160_v26 }
  0x8f   :  { %v164_v31 = vmax.f32 %v133_v29, 0.0  ;;  %v168_v32 = vmax.f32 %v145_v30, 0.0 }
  0x90   :  { %v111_v33 = vpop.f32.mrf.mxu0  ;;  %v123_v34 = vpop.f32.mrf.mxu1 }
  0x91   :  { %181 = vst.msk [vmem:[%s389_s3 + $0x40] sm:$0xff] %vm172_vm2, %v164_v31  ;;  %v112_v35 = vadd.f32 %v222_v20, %v111_v33  ;;  %v124_v36 = vadd.f32 %v222_v20, %v123_v34 }
  0x92   :  { %185 = vst.msk [vmem:[%s389_s3 + $0x60] sm:$0xff] %vm172_vm2, %v168_v32 }
  0x93   :  { %v157_v37 = vmax.f32 %v112_v35, 0.0  ;;  %v161_v38 = vmax.f32 %v124_v36, 0.0 }
  0x94   :  { %v135_v39 = vpop.f32.mrf.mxu2  ;;  %v147_v40 = vpop.f32.mrf.mxu3 }
  0x95   :  { %174 = vst.msk [vmem:[%s389_s3 + $0x8] sm:$0xff] %vm172_vm2, %v157_v37  ;;  %v136_v41 = vadd.f32 %v222_v20, %v135_v39  ;;  %v148_v42 = vadd.f32 %v222_v20, %v147_v40 }
  0x96   :  { %178 = vst.msk [vmem:[%s389_s3 + $0x28] sm:$0xff] %vm172_vm2, %v161_v38 }
  0x97   :  { %v165_v43 = vmax.f32 %v136_v41, 0.0  ;;  %v169_v44 = vmax.f32 %v148_v42, 0.0 }
  0x98   :  { %v114_v45 = vpop.f32.mrf.mxu0  ;;  %v126_v46 = vpop.f32.mrf.mxu1 }
  0x99   :  { %182 = vst.msk [vmem:[%s389_s3 + $0x48] sm:$0xff] %vm172_vm2, %v165_v43  ;;  %v115_v47 = vadd.f32 %v222_v20, %v114_v45  ;;  %v127_v48 = vadd.f32 %v222_v20, %v126_v46 }
  0x9a   :  { %186 = vst.msk [vmem:[%s389_s3 + $0x68] sm:$0xff] %vm172_vm2, %v169_v44 }
  0x9b   :  { %v158_v49 = vmax.f32 %v115_v47, 0.0  ;;  %v162_v50 = vmax.f32 %v127_v48, 0.0 }
  0x9c   :  { %v138_v51 = vpop.f32.mrf.mxu2  ;;  %v150_v52 = vpop.f32.mrf.mxu3 }
  0x9d   :  { %175 = vst.msk [vmem:[%s389_s3 + $0x10] sm:$0xff] %vm172_vm2, %v158_v49  ;;  %v139_v53 = vadd.f32 %v222_v20, %v138_v51  ;;  %v151_v54 = vadd.f32 %v222_v20, %v150_v52 }
  0x9e   :  { %179 = vst.msk [vmem:[%s389_s3 + $0x30] sm:$0xff] %vm172_vm2, %v162_v50 }
  0x9f   :  { %v166_v55 = vmax.f32 %v139_v53, 0.0  ;;  %v170_v56 = vmax.f32 %v151_v54, 0.0 }
  0xa0   :  { %v117_v57 = vpop.f32.mrf.mxu0  ;;  %v129_v58 = vpop.f32.mrf.mxu1 }
  0xa1   :  { %183 = vst.msk [vmem:[%s389_s3 + $0x50] sm:$0xff] %vm172_vm2, %v166_v55  ;;  %v118_v59 = vadd.f32 %v222_v20, %v117_v57  ;;  %v130_v60 = vadd.f32 %v222_v20, %v129_v58 }
  0xa2   :  { %187 = vst.msk [vmem:[%s389_s3 + $0x70] sm:$0xff] %vm172_vm2, %v170_v56 }
  0xa3   :  { %v159_v61 = vmax.f32 %v118_v59, 0.0  ;;  %v163_v62 = vmax.f32 %v130_v60, 0.0 }
  0xa4   :  { %v141_v63 = vpop.f32.mrf.mxu2  ;;  %v153_v0 = vpop.f32.mrf.mxu3 }
  0xa5   :  { %176 = vst.msk [vmem:[%s389_s3 + $0x18] sm:$0xff] %vm172_vm2, %v159_v61  ;;  %v142_v1 = vadd.f32 %v222_v20, %v141_v63  ;;  %v154_v2 = vadd.f32 %v222_v20, %v153_v0 }
  0xa6   :  { %180 = vst.msk [vmem:[%s389_s3 + $0x38] sm:$0xff] %vm172_vm2, %v163_v62 }
  0xa7   :  { %v167_v3 = vmax.f32 %v142_v1, 0.0  ;;  %v171_v4 = vmax.f32 %v154_v2, 0.0 }
  0xa9   :  { %184 = vst.msk [vmem:[%s389_s3 + $0x58] sm:$0xff] %vm172_vm2, %v167_v3 }
  0xaa   :  { %188 = vst.msk [vmem:[%s389_s3 + $0x78] sm:$0xff] %vm172_vm2, %v171_v4 }

</bundles_post_ra>
